<compile_context>
chip_gen: v7x
topology: tpu7x:2x2x1
jax: 0.10.0
libtpu: 0.0.40
codegen_flags: <defaults>
</compile_context>

<pallas_src>
import jax
import jax.numpy as jnp
from jax.experimental import pallas as pl
from jax.experimental.pallas import tpu as pltpu


def _affine_kernel(x_ref, scale_ref, bias_ref, o_ref):
    # x_ref:     (nc_tile, lane_tile) tile of the flattened input
    # scale_ref: (nc_tile, 1) per-row scale (f32), broadcasts along lanes
    # bias_ref:  (nc_tile, 1) per-row bias  (f32)
    x = x_ref[...].astype(jnp.float32)
    y = x * scale_ref[...] + bias_ref[...]
    o_ref[...] = y.astype(o_ref.dtype)


def _round_down(v, m):
    return (v // m) * m


def _vmem_budget_bytes():
    """(per_tile_budget, vmem_limit) chosen from detected VMEM capacity."""
    try:
        cap = int(pltpu.get_tpu_info().vmem_capacity_bytes)
    except Exception:
        cap = 0  # unknown -> be conservative (v7x-safe)
    if cap >= 100 * 1024 * 1024:
        # v5e / v6e: 128 MiB physical VMEM.  4 pipelined tile buffers
        # (2x input + 2x output) of 14 MiB each = 56 MiB, limit 96 MiB.
        return 14 * 1024 * 1024, 96 * 1024 * 1024
    # v7x (64 MiB per TensorCore) or unknown: 4 x 10 MiB = 40 MiB pipelined,
    # limit 48 MiB -> comfortably under physical VMEM.
    return 10 * 1024 * 1024, 48 * 1024 * 1024


def functional_module(x, mean, std):
    """Applies the wrapped functional (per-channel normalize) to NCHW input."""
    n, c, h, w = x.shape
    nc = n * c
    hw = h * w

    x2d = x.reshape(nc, hw)

    # Fuse (x - mean) / std into x * scale + bias, params kept in f32.
    mean_f32 = mean.astype(jnp.float32)
    std_f32 = std.astype(jnp.float32)
    scale_row = jnp.tile(1.0 / std_f32, n).reshape(nc, 1)
    bias_row = jnp.tile(-mean_f32 / std_f32, n).reshape(nc, 1)

    # --- Tile selection (fixed aligned tiles, cdiv grid) ---------------------
    itemsize = jnp.dtype(x.dtype).itemsize
    sublane_unit = {1: 32, 2: 16}.get(itemsize, 8)  # f32:8, bf16:16, int8/fp8:32

    per_tile_budget_bytes, vmem_limit_bytes = _vmem_budget_bytes()
    max_tile_elems = max(sublane_unit * 128, per_tile_budget_bytes // itemsize)

    # Lanes: take the full row (contiguous linear DMA per step) whenever a
    # sublane_unit-deep row slab fits the budget; otherwise a 128-aligned cap
    # derived from the byte budget.
    if hw <= 128 or hw * sublane_unit <= max_tile_elems:
        lane_tile = hw  # full-extent block along lanes — always legal
    else:
        lane_tile = max(128, _round_down(max_tile_elems // sublane_unit, 128))
        lane_tile = min(lane_tile, _round_down(hw, 128))

    # Sublanes: fill the remaining budget with rows.
    max_rows = max(sublane_unit, max_tile_elems // lane_tile)
    if nc <= max_rows:
        nc_tile = nc  # full-extent block — always legal
    else:
        nc_tile = max(sublane_unit, _round_down(max_rows, sublane_unit))

    # hw is the last (fastest) grid axis so scale/bias blocks (index (i, 0))
    # are reused across inner steps without re-DMA.
    grid = (pl.cdiv(nc, nc_tile), pl.cdiv(hw, lane_tile))

    out2d = pl.pallas_call(
        _affine_kernel,
        out_shape=jax.ShapeDtypeStruct((nc, hw), x.dtype),
        grid_spec=pltpu.PrefetchScalarGridSpec(
            num_scalar_prefetch=0,
            grid=grid,
            in_specs=[
                pl.BlockSpec((nc_tile, lane_tile), lambda i, j: (i, j)),
                pl.BlockSpec((nc_tile, 1), lambda i, j: (i, 0)),
                pl.BlockSpec((nc_tile, 1), lambda i, j: (i, 0)),
            ],
            out_specs=pl.BlockSpec((nc_tile, lane_tile), lambda i, j: (i, j)),
        ),
        compiler_params=pltpu.CompilerParams(
            dimension_semantics=("parallel", "arbitrary"),
            vmem_limit_bytes=vmem_limit_bytes,
        ),
    )(x2d, scale_row, bias_row)

    return out2d.reshape(n, c, h, w)


if __name__ == "__main__":
    key = jax.random.PRNGKey(0)
    (k_x,) = jax.random.split(key, 1)

    # Small video-frame batch: N=2, C=4, H=16, W=16 (H*W = 256)
    n, c, h, w = 2, 4, 16, 16
    x = jax.random.normal(k_x, (n, c, h, w), dtype=jnp.float32)

    # Deterministic per-channel normalization parameters (the wrapped functional).
    mean = jnp.arange(c, dtype=jnp.float32) * 0.1          # [0.0, 0.1, 0.2, 0.3]
    std = jnp.arange(1, c + 1, dtype=jnp.float32) * 0.5    # [0.5, 1.0, 1.5, 2.0]

    out = functional_module(x, mean, std)
    out = jax.block_until_ready(out)

    # Reference check against plain JAX.
    ref = (x - mean[None, :, None, None]) / std[None, :, None, None]
    assert out.shape == (n, c, h, w)
    assert out.dtype == x.dtype
    assert jnp.allclose(out, ref, atol=1e-5, rtol=1e-5)

    print("KERNEL_OK")
</pallas_src>

<mosaic_0001>
module attributes {stable_mosaic.version = 11 : i64} {
  func.func @_affine_kernel(%arg0: i32, %arg1: i32, %arg2: memref<8x256xf32, #tpu.memory_space<vmem>>, %arg3: memref<8x1xf32, #tpu.memory_space<vmem>>, %arg4: memref<8x1xf32, #tpu.memory_space<vmem>>, %arg5: memref<8x256xf32, #tpu.memory_space<vmem>>) attributes {dimension_semantics = [#tpu.dimension_semantics<parallel>, #tpu.dimension_semantics<arbitrary>], iteration_bounds = array<i64: 1, 1>, scalar_prefetch = 0 : i64, scratch_operands = 0 : i64, tpu.core_type = #tpu.core_type<tc>, window_params = [{transform_indices = @transform_0, window_bounds = array<i64: 8, 256>}, {transform_indices = @transform_1, window_bounds = array<i64: 8, 1>}, {transform_indices = @transform_2, window_bounds = array<i64: 8, 1>}, {transform_indices = @transform_3, window_bounds = array<i64: 8, 256>}]} {
    %c0 = arith.constant 0 : index
    %c0_0 = arith.constant 0 : index
    %0 = vector.load %arg2[%c0, %c0_0] : memref<8x256xf32, #tpu.memory_space<vmem>>, vector<8x256xf32>
    %c0_1 = arith.constant 0 : index
    %c0_2 = arith.constant 0 : index
    %1 = vector.load %arg3[%c0_1, %c0_2] : memref<8x1xf32, #tpu.memory_space<vmem>>, vector<8x1xf32>
    %2 = vector.broadcast %1 : vector<8x1xf32> to vector<8x256xf32>
    %3 = arith.mulf %0, %2 : vector<8x256xf32>
    %c0_3 = arith.constant 0 : index
    %c0_4 = arith.constant 0 : index
    %4 = vector.load %arg4[%c0_3, %c0_4] : memref<8x1xf32, #tpu.memory_space<vmem>>, vector<8x1xf32>
    %5 = vector.broadcast %4 : vector<8x1xf32> to vector<8x256xf32>
    %6 = arith.addf %3, %5 : vector<8x256xf32>
    %c0_5 = arith.constant 0 : index
    %c0_6 = arith.constant 0 : index
    %7 = vector.load %arg5[%c0_5, %c0_6] : memref<8x256xf32, #tpu.memory_space<vmem>>, vector<8x256xf32>
    tpu.vector_store %arg5[%c0_5, %c0_6], %6 {strides = array<i32>} : memref<8x256xf32, #tpu.memory_space<vmem>>, vector<8x256xf32>,
    return
  }
  func.func @transform_0(%arg0: i32, %arg1: i32) -> (i32, i32) {
    %c0_i32 = arith.constant 0 : i32
    return %arg0, %arg1 : i32, i32
  }
  func.func @transform_1(%arg0: i32, %arg1: i32) -> (i32, i32) {
    %c0_i32 = arith.constant 0 : i32
    %c0_i32_0 = arith.constant 0 : i32
    return %arg0, %c0_i32 : i32, i32
  }
  func.func @transform_2(%arg0: i32, %arg1: i32) -> (i32, i32) {
    %c0_i32 = arith.constant 0 : i32
    %c0_i32_0 = arith.constant 0 : i32
    return %arg0, %c0_i32 : i32, i32
  }
  func.func @transform_3(%arg0: i32, %arg1: i32) -> (i32, i32) {
    %c0_i32 = arith.constant 0 : i32
    return %arg0, %arg1 : i32, i32
  }
}

</mosaic_0001>

<bundles_post_ra>
// kernel: tpu_custom_call.1
= control target key start
LH: loop header
LB: loop body
LE: loop exit
PB: predicated region body
PF: predicated region fallthrough
CT: control target
= control target key end

     0   :  { %s122_s0 = inlined_call_operand.vmem [shape: f32[8,256], index: 0, kind: input, shape index: {}]   ;;  %s123_s1 = inlined_call_operand.vmem [shape: f32[8,1], index: 1, kind: input, shape index: {}]   ;;  %s124_s2 = inlined_call_operand.vmem [shape: f32[8,1], index: 2, kind: input, shape index: {}]   ;;  %s125_s3 = inlined_call_operand.hbm [shape: f32[8,256], index: 3, kind: output, shape index: {}]  }
   0x1   :  { %v17_v0 = vld [vmem:[%s123_s1] sm:$0xff] }
   0x2   :  { %8 = vsyncpa [#allocation3], 0  ;;  %v76_v1 = vmov 0   ;;  %v25_v2 = vld [vmem:[%s124_s2] sm:$0xff]  ;;  %v16_v5 = vld [vmem:[%s122_s0 + $0x8] sm:$0xff]  ;;  %s77_s20 = smov [#allocation2]  }
   0x3   :  { %51 = vset.pattern.permute.xlu0 %v76_v1  ;;  %v15_v4 = vld [vmem:[%s122_s0] sm:$0xff]  ;;  %s41_s1 = sshll.u32 %s77_s20, 4  ;;  %s42_s1 = int_to_ptr.vmem [resolvable:$true] %s41_s1 }
   0x4   :  { %20 = vperm.xlu0 %51, %v17_v0   ;;  %s52_s2 = scalar_lea.vmem %s42_s1, 256  ;;  %p57_p1 = scmp.lt.s32.totalorder %s42_s1, %s42_s1 }
   0x5   :  { %p53_p0 = scmp.ne.s32.totalorder %s42_s1, %s52_s2  ;;  %p58_p2 = scmp.lt.s32.totalorder %s52_s2, %s52_s2 }
   0x7   :  { %p59_p3 = por %p58_p2, %p57_p1 }
   0x8   :  { %28 = vperm.xlu0 %51, %v25_v2  }
   0x9   :  { %p60_p4 = pnand %p59_p3, %p53_p0 }
  0x83   :  { %v21_v3 = vpop.permute.xlu0 %20 }
  0x84   :  { %v23_v6 = vmul.f32 %v21_v3, %v15_v4  ;;  %v24_v7 = vmul.f32 %v21_v3, %v16_v5 }
  0x87   :  { %v29_v8 = vpop.permute.xlu0 %28 }
  0x88   :  { %v31_v9 = vadd.f32 %v29_v8, %v23_v6  ;;  %v32_v10 = vadd.f32 %v29_v8, %v24_v7 }
  0x8a   :  { %33 = vst [vmem:[#allocation2] sm:$0xff] %v31_v9  ;;  %34 = vst [vmem:[#allocation2 + $0x8] sm:$0xff] %v32_v10 }
  0x8b   :  { %63 = shalt.err (!%p60_p4)
}
  0x8c   :  { %s64_s0 = scalar_lea.hbm %s125_s3, 256 }
  0x8d   :  { %p65_p5 = scmp.ne.s32.totalorder %s125_s3, %s64_s0  ;;  %p68_p6 = scmp.lt.u32.totalorder %s64_s0, %s125_s3 }
  0x8f   :  { %p70_p7 = pnand %p68_p6, %p65_p5 }
  0x91   :  { %73 = shalt.err (!%p70_p7)
}
  0x92   :  { %44 = dma.vmem_to_hbm [thread:$0]  %s42_s1, 256, %s125_s3, [#allocation3]  }
  0x93   :  { %74 = dma.done.wait [#allocation3], 256  }
  0x94   :  { %75 = vsyncadd [#allocation3], 4294967040 }
  0x95   :  { %48 = vsyncpa [#allocation3], 1 }

</bundles_post_ra>
